<compile_context>
chip_gen: v5e
topology: v5e:2x2
jax: 0.10.0
libtpu: 0.0.40
codegen_flags: <defaults>
</compile_context>

<pallas_src>
import math

import jax
import jax.numpy as jnp
from jax.experimental import pallas as pl
from jax.experimental.pallas import tpu as pltpu


def _round_up(x: int, m: int) -> int:
    return ((x + m - 1) // m) * m


def _predictor_kernel(c_ref, w_ref, b_ref, o_ref):
    # c_ref: (tm, Cin), w_ref: (Cin, tn), b_ref: (1, tn), o_ref: (tm, tn)
    acc = jnp.dot(c_ref[...], w_ref[...], preferred_element_type=jnp.float32)
    # bias add / epilogue in f32 (safe on v5e where the VPU has no bf16 path)
    o_ref[...] = (acc + b_ref[...].astype(jnp.float32)).astype(o_ref.dtype)


def fuse_predictor_params(W: jax.Array, b: jax.Array, *,
                          compute_dtype=None, lane_multiple: int = 128):
    """One-time parameter prep (call at init, NOT per forward).

    W: (K, Cin, Cout), b: (K, Cout)
      -> W_fused: (Cin, Np), b_fused: (1, Np) with Np = round_up(K*Cout, 128).

    `compute_dtype=jnp.bfloat16` stores the weights pre-cast (halves weight
    DMA on v6e/v7x); bias stays f32 for the f32 epilogue.
    """
    K, Cin, Cout = W.shape
    N = K * Cout
    W_f = jnp.transpose(W, (1, 0, 2)).reshape(Cin, N)
    b_f = b.reshape(1, N).astype(jnp.float32)
    Np = _round_up(N, lane_multiple)
    if Np != N:
        W_f = jnp.pad(W_f, ((0, 0), (0, Np - N)))
        b_f = jnp.pad(b_f, ((0, 0), (0, Np - N)))
    if compute_dtype is not None:
        W_f = W_f.astype(compute_dtype)
    return W_f, b_f


def predictor_forward(
    c_t: jax.Array,
    W_fused: jax.Array,
    b_fused: jax.Array,
    *,
    k: int,
    output_dim: int,
    block_b: int = 256,
    block_n: int = 512,
    compute_dtype=None,
    vmem_budget_bytes: int = 48 << 20,   # safe under v7x's 64 MiB VMEM
) -> jax.Array:
    """c_t: (..., Cin); W_fused: (Cin, Np); b_fused: (1, Np).

    Returns (..., k, output_dim).  Any leading dims of c_t (e.g. a time axis)
    are folded into the matmul row dimension so a single launch covers them.
    """
    *lead, Cin = c_t.shape
    Cin_w, Np = W_fused.shape
    assert Cin == Cin_w, (Cin, Cin_w)
    N = k * output_dim
    assert N <= Np, (N, Np)
    out_dtype = c_t.dtype

    B = int(math.prod(lead)) if lead else 1
    c2d = c_t.reshape(B, Cin)

    # Match activation dtype to (pre-cast) weight dtype for the MXU bf16 path.
    if compute_dtype is None and W_fused.dtype != c2d.dtype:
        compute_dtype = W_fused.dtype
    if compute_dtype is not None:
        c2d = c2d.astype(compute_dtype)
        if W_fused.dtype != compute_dtype:
            W_fused = W_fused.astype(compute_dtype)

    c_bytes = jnp.dtype(c2d.dtype).itemsize
    w_bytes = jnp.dtype(W_fused.dtype).itemsize
    o_bytes = jnp.dtype(out_dtype).itemsize

    # ---- tile selection ------------------------------------------------
    tm = B if B <= block_b else block_b          # full extent or (8,*)-aligned
    tn = Np if Np <= block_n else block_n        # Np is a multiple of 128

    def _footprint(tm_, tn_):
        # double-buffered in/out tiles + bias row
        return 2 * (tm_ * Cin * c_bytes + Cin * tn_ * w_bytes
                    + tn_ * 4 + tm_ * tn_ * o_bytes)

    while _footprint(tm, tn) > vmem_budget_bytes and tn > 128:
        tn = max(128, tn // 2)
    while _footprint(tm, tn) > vmem_budget_bytes and tm > 8:
        tm = max(8, tm // 2)

    grid_m = pl.cdiv(B, tm)
    grid_n = pl.cdiv(Np, tn)

    # v7x megacore: make sure a parallel axis has >= 2 steps when there is
    # enough work (no-op on v5e/v6e, up to ~2x on v7x).
    if grid_m == 1 and grid_n == 1:
        if B >= 16:
            tm = _round_up(pl.cdiv(B, 2), 8)
            grid_m = pl.cdiv(B, tm)
        elif Np >= 256:
            tn = _round_up(pl.cdiv(Np, 2), 128)
            grid_n = pl.cdiv(Np, tn)

    # ---- grid order: keep the larger operand's tile resident ------------
    weights_heavy = (Cin * Np * w_bytes) > (B * Cin * c_bytes)
    if weights_heavy:
        # rows innermost: W N-tile resident, restream the cheap c_t tile
        grid = (grid_n, grid_m)
        c_spec = pl.BlockSpec((tm, Cin), lambda j, i: (i, 0))
        w_spec = pl.BlockSpec((Cin, tn), lambda j, i: (0, j))
        b_spec = pl.BlockSpec((1, tn), lambda j, i: (0, j))
        o_spec = pl.BlockSpec((tm, tn), lambda j, i: (i, j))
    else:
        grid = (grid_m, grid_n)
        c_spec = pl.BlockSpec((tm, Cin), lambda i, j: (i, 0))
        w_spec = pl.BlockSpec((Cin, tn), lambda i, j: (0, j))
        b_spec = pl.BlockSpec((1, tn), lambda i, j: (0, j))
        o_spec = pl.BlockSpec((tm, tn), lambda i, j: (i, j))

    cost = pl.CostEstimate(
        flops=2 * B * Cin * Np,
        transcendentals=0,
        bytes_accessed=(B * Cin * c_bytes + Cin * Np * w_bytes
                        + Np * 4 + B * Np * o_bytes),
    )

    vmem_limit = int(min(64 << 20, max(_footprint(tm, tn) + (2 << 20), 16 << 20)))

    out_flat = pl.pallas_call(
        _predictor_kernel,
        out_shape=jax.ShapeDtypeStruct((B, Np), out_dtype),
        grid=grid,
        in_specs=[c_spec, w_spec, b_spec],
        out_specs=o_spec,
        compiler_params=pltpu.CompilerParams(
            dimension_semantics=("parallel", "parallel"),
            vmem_limit_bytes=vmem_limit,
        ),
        cost_estimate=cost,
    )(c2d, W_fused, b_fused)

    # drop lane padding, then free view back to (..., k, output_dim)
    out = out_flat[:, :N] if Np != N else out_flat
    return out.reshape(*lead, k, output_dim)


def init_predictor_params(key, input_dim: int, output_dim: int, k: int,
                          dtype=jnp.float32):
    """Deterministic synthetic init mirroring nn.Linear's uniform init.

    Returns W: (K, Cin, Cout) (pre-transposed so math is c_t @ W_k), b: (K, Cout).
    """
    kw, kb = jax.random.split(key)
    bound = 1.0 / jnp.sqrt(jnp.asarray(input_dim, dtype=jnp.float32))
    W = jax.random.uniform(kw, (k, input_dim, output_dim), dtype=dtype,
                           minval=-bound, maxval=bound)
    b = jax.random.uniform(kb, (k, output_dim), dtype=dtype,
                           minval=-bound, maxval=bound)
    return W, b


if __name__ == "__main__":
    batch = 2
    input_dim = 32     # gar_hidden_dim (c_dim)
    output_dim = 16    # genc emb_dim (z_dim)
    k = 4

    key = jax.random.PRNGKey(0)
    kx, kp = jax.random.split(key)

    c_t = jax.random.normal(kx, (batch, input_dim), dtype=jnp.float32)
    W, b = init_predictor_params(kp, input_dim, output_dim, k)

    # pure-JAX reference
    z_ref = jnp.einsum("bi,kio->bko", c_t, W) + b[None, :, :]

    # ---- f32 path (strict check) ----
    W_f32, b_f32 = fuse_predictor_params(W, b)                 # one-time fuse+pad
    z_hat = predictor_forward(c_t, W_f32, b_f32, k=k, output_dim=output_dim)
    z_hat = jax.block_until_ready(z_hat)
    assert z_hat.shape == (batch, k, output_dim), z_hat.shape
    assert jnp.allclose(z_hat, z_ref, atol=1e-5, rtol=1e-5)

    # ---- bf16-stored-weights path (relaxed tolerance: inputs are rounded,
    #      accumulation stays f32) ----
    W_bf16, b_bf16 = fuse_predictor_params(W, b, compute_dtype=jnp.bfloat16)
    z_hat_bf16 = predictor_forward(c_t, W_bf16, b_bf16, k=k, output_dim=output_dim)
    z_hat_bf16 = jax.block_until_ready(z_hat_bf16)
    assert z_hat_bf16.shape == (batch, k, output_dim), z_hat_bf16.shape
    assert jnp.allclose(z_hat_bf16, z_ref, atol=5e-2, rtol=5e-2)

    # ---- folded time-axis path: (batch, T, Cin) -> (batch, T, k, Cout) ----
    T = 8
    c_seq = jax.random.normal(kx, (batch, T, input_dim), dtype=jnp.float32)
    z_seq = predictor_forward(c_seq, W_f32, b_f32, k=k, output_dim=output_dim)
    z_seq = jax.block_until_ready(z_seq)
    z_seq_ref = jnp.einsum("bti,kio->btko", c_seq, W) + b[None, None, :, :]
    assert z_seq.shape == (batch, T, k, output_dim), z_seq.shape
    assert jnp.allclose(z_seq, z_seq_ref, atol=1e-5, rtol=1e-5)

    print("KERNEL_OK")
</pallas_src>

<mosaic_0001>
module attributes {stable_mosaic.version = 11 : i64} {
  func.func @_predictor_kernel(%arg0: i32, %arg1: i32, %arg2: memref<2x32xf32, #tpu.memory_space<vmem>>, %arg3: memref<32x128xf32, #tpu.memory_space<vmem>>, %arg4: memref<1x128xf32, #tpu.memory_space<vmem>>, %arg5: memref<2x128xf32, #tpu.memory_space<vmem>>) attributes {dimension_semantics = [#tpu.dimension_semantics<parallel>, #tpu.dimension_semantics<parallel>], iteration_bounds = array<i64: 1, 1>, scalar_prefetch = 0 : i64, scratch_operands = 0 : i64, tpu.core_type = #tpu.core_type<tc>, window_params = [{transform_indices = @transform_0, window_bounds = array<i64: 2, 32>}, {transform_indices = @transform_1, window_bounds = array<i64: 32, 128>}, {transform_indices = @transform_2, window_bounds = array<i64: 1, 128>}, {transform_indices = @transform_3, window_bounds = array<i64: 2, 128>}]} {
    %c0 = arith.constant 0 : index
    %c0_0 = arith.constant 0 : index
    %0 = vector.load %arg2[%c0, %c0_0] : memref<2x32xf32, #tpu.memory_space<vmem>>, vector<2x32xf32>
    %c0_1 = arith.constant 0 : index
    %c0_2 = arith.constant 0 : index
    %1 = vector.load %arg3[%c0_1, %c0_2] : memref<32x128xf32, #tpu.memory_space<vmem>>, vector<32x128xf32>
    %cst = arith.constant dense<0.000000e+00> : vector<2x128xf32>
    %2 = tpu.matmul %0, %1, %cst {dimension_numbers = #tpu.dot_dimension_numbers<[1], [0], [0], [1], [0, 0, 1, 1], [], []>} : vector<2x32xf32>, vector<32x128xf32>, vector<2x128xf32> -> vector<2x128xf32>
    %c0_3 = arith.constant 0 : index
    %c0_4 = arith.constant 0 : index
    %3 = vector.load %arg4[%c0_3, %c0_4] : memref<1x128xf32, #tpu.memory_space<vmem>>, vector<1x128xf32>
    %4 = vector.broadcast %3 : vector<1x128xf32> to vector<2x128xf32>
    %5 = arith.addf %2, %4 : vector<2x128xf32>
    %c0_5 = arith.constant 0 : index
    %c0_6 = arith.constant 0 : index
    %6 = vector.load %arg5[%c0_5, %c0_6] : memref<2x128xf32, #tpu.memory_space<vmem>>, vector<2x128xf32>
    tpu.vector_store %arg5[%c0_5, %c0_6], %5 {strides = array<i32>} : memref<2x128xf32, #tpu.memory_space<vmem>>, vector<2x128xf32>,
    return
  }
  func.func @transform_0(%arg0: i32, %arg1: i32) -> (i32, i32) {
    %c0_i32 = arith.constant 0 : i32
    %c0_i32_0 = arith.constant 0 : i32
    return %arg1, %c0_i32 : i32, i32
  }
  func.func @transform_1(%arg0: i32, %arg1: i32) -> (i32, i32) {
    %c0_i32 = arith.constant 0 : i32
    %c0_i32_0 = arith.constant 0 : i32
    return %c0_i32, %arg0 : i32, i32
  }
  func.func @transform_2(%arg0: i32, %arg1: i32) -> (i32, i32) {
    %c0_i32 = arith.constant 0 : i32
    %c0_i32_0 = arith.constant 0 : i32
    return %c0_i32, %arg0 : i32, i32
  }
  func.func @transform_3(%arg0: i32, %arg1: i32) -> (i32, i32) {
    %c0_i32 = arith.constant 0 : i32
    return %arg1, %arg0 : i32, i32
  }
}

</mosaic_0001>

<bundles_post_ra>
// kernel: tpu_custom_call.1
= control target key start
LH: loop header
LB: loop body
LE: loop exit
PB: predicated region body
PF: predicated region fallthrough
CT: control target
= control target key end

     0   :  { %8 = vsyncpa [#allocation3], 0  ;;  %s219_s0 = inlined_call_operand.hbm [shape: f32[2,32], index: 0, kind: input, shape index: {}]   ;;  %s220_s1 = inlined_call_operand.hbm [shape: f32[32,128], index: 1, kind: input, shape index: {}]   ;;  %s221_s2 = inlined_call_operand.vmem [shape: f32[1,128], index: 2, kind: input, shape index: {}]   ;;  %s222_s3 = inlined_call_operand.hbm [shape: f32[2,128], index: 3, kind: output, shape index: {}]  }
   0x1   :  { %9 = vsyncpa [#allocation6], 0 }
   0x2   :  { %10 = vsyncpa [#allocation4], 0  ;;  %s16_s14 = sshll.u32 %s219_s0, 4  ;;  %s182_s15 = smov [#allocation2]   ;;  %s17_s14 = int_to_ptr.hbm [resolvable:$true] %s16_s14 }
   0x3   :  { %s18_s16 = sshll.u32 %s182_s15, 4  ;;  %s26_s19 = sshll.u32 %s220_s1, 4  ;;  %s19_s16 = int_to_ptr.vmem [resolvable:$true] %s18_s16  ;;  %s27_s19 = int_to_ptr.hbm [resolvable:$true] %s26_s19 }
   0x4   :  { %21 = dma.hbm_to_vmem [thread:$0]  %s17_s14, 32, %s19_s16, [#allocation3]  }
   0x5   :  { %s183_s20 = smov [#allocation5]   ;;  %s184_s22 = smov 128  }
   0x6   :  { %s28_s21 = sshll.u32 %s183_s20, 4  ;;  %s185_s23 = smov 8   ;;  %s29_s21 = int_to_ptr.vmem [resolvable:$true] %s28_s21 }
   0x7   :  { %34 = dma.hbm_to_vmem [thread:$0]  %s27_s19, 512, %s29_s21, [#allocation6], %s184_s22, %s184_s22, %s185_s23  }
   0x8   :  { %176 = dma.done.wait [#allocation3], 32  }
   0x9   :  { %177 = vsyncadd [#allocation3], 4294967264 }
   0xa   :  { %178 = dma.done.wait [#allocation6], 512  }
   0xb   :  { %179 = vsyncadd [#allocation6], 4294966784  ;;  %v49_v0 = vld [vmem:[#allocation5 + $0x18] sm:$0xff]  ;;  %v48_v1 = vld [vmem:[#allocation5 + $0x10] sm:$0xff]  ;;  %vm54_vm0 = vcmask 261120   ;;  %s186_s24 = smov [#allocation7]  }
   0xc   :  { %70 = vmatpush.msra.mxu0 %v49_v0  ;;  %v47_v2 = vld [vmem:[#allocation5 + $0x8] sm:$0xff]  ;;  %v46_v3 = vld [vmem:[#allocation5] sm:$0xff]  ;;  %v45_v4 = vld [vmem:[#allocation2] sm:$0x3]  ;;  %s84_s25 = sshll.u32 %s186_s24, 4  ;;  %s86_s28 = sshll.u32 %s222_s3, 4  ;;  %s85_s25 = int_to_ptr.vmem [resolvable:$true] %s84_s25  ;;  %s87_s28 = int_to_ptr.hbm [resolvable:$true] %s86_s28 }
   0xd   :  { %v103_v5 = vld [vmem:[%s221_s2] ss:$0 sm:$0xff] }
   0xe   :  { %71 = vmatpush.msra.mxu0 %v48_v1 }
  0x10   :  { %72 = vmatpush.msra.mxu0 %v47_v2 }
  0x12   :  { %73 = vmatpush.msra.mxu0 %v46_v3 }
  0x13   :  { %97 = vmatmul.msk.f32.vlgmr.msra.gmra.mxu0 %vm54_vm0, %v45_v4 }
  0x90   :  { %v75_v6 = vpop.f32.mrf.mxu0 }
  0x91   :  { %v76_v7 = vadd.f32 %v103_v5, %v75_v6 }
  0x93   :  { %78 = vst [vmem:[#allocation7] sm:$0x3] %v76_v7 }
  0x94   :  { %89 = dma.vmem_to_hbm [thread:$0]  %s85_s25, 32, %s87_s28, [#allocation4]  }
  0x95   :  { %180 = dma.done.wait [#allocation4], 32  }
  0x96   :  { %181 = vsyncadd [#allocation4], 4294967264 }
  0x97   :  { %94 = vsyncpa [#allocation3], 1 }
  0x98   :  { %95 = vsyncpa [#allocation6], 1 }
  0x99   :  { %96 = vsyncpa [#allocation4], 1 }

</bundles_post_ra>
